<compile_context>
chip_gen: v7x
topology: tpu7x:2x2x1
jax: 0.10.0
libtpu: 0.0.40
codegen_flags: <defaults>
</compile_context>

<pallas_src>
import functools

import jax
import jax.numpy as jnp
from jax.experimental import pallas as pl
from jax.experimental.pallas import tpu as pltpu


def _round_up(n, m):
    return ((n + m - 1) // m) * m


# --------------------------------------------------------------------------
# Kernel body
# --------------------------------------------------------------------------
def _mlp_kernel(x_ref, w1_ref, b1_ref, w2_ref, b2_ref, g_ref, beta_ref, o_ref,
                *, d_real, d_pad):
    x = x_ref[...]                                  # (TM, Dp)
    xb = x.astype(jnp.bfloat16)                     # MXU input
    xf = x.astype(jnp.float32)                      # residual path in f32

    # Linear 1 + ReLU (bias add + ReLU in f32).
    h = jnp.dot(xb, w1_ref[...], preferred_element_type=jnp.float32)
    h = jnp.maximum(h + b1_ref[...], 0.0)

    # Linear 2 (+ Dropout as identity in eval mode) + residual, all f32.
    y = jnp.dot(h.astype(jnp.bfloat16), w2_ref[...],
                preferred_element_type=jnp.float32)
    z = y + b2_ref[...] + xf

    # LayerNorm over the *real* feature dim only.  Padded columns of z are
    # exactly 0 (padded W cols / b / x are 0), so the plain sum gives the
    # correct mean; the variance masks padded columns with a cheap (1, Dp)
    # row mask (no full-tile iota).  eps=1e-5, population variance.
    inv_d = jnp.float32(1.0 / d_real)
    mu = jnp.sum(z, axis=-1, keepdims=True) * inv_d
    diff = z - mu
    if d_pad != d_real:
        col = jax.lax.broadcasted_iota(jnp.int32, (1, d_pad), 1)
        diff = jnp.where(col < d_real, diff, 0.0)
    var = jnp.sum(diff * diff, axis=-1, keepdims=True) * inv_d
    zn = diff * jax.lax.rsqrt(var + jnp.float32(1e-5))   # EUP rsqrt
    o_ref[...] = (zn * g_ref[...] + beta_ref[...]).astype(o_ref.dtype)


# --------------------------------------------------------------------------
# VMEM accounting / tiling
# --------------------------------------------------------------------------
def _vmem_budget_bytes():
    """Generation-aware usable-VMEM budget (never the full physical size)."""
    phys = 64 * 2**20                       # conservative default (v7x per-TC)
    try:
        phys = int(pltpu.get_tpu_info().vmem_capacity_bytes)
    except Exception:
        pass
    # ~100 MiB on 128 MiB parts (v5e/v6e), ~50 MiB on 64 MiB parts (v7x).
    return max(32 * 2**20, min(phys - 8 * 2**20, int(phys * 0.78)))


def _vmem_need(tm, d_pad, x_bytes):
    """Conservative footprint: 2 pipeline buffers for *every* operand
    (including the constant-index weights, even though we request
    Buffered(1)) plus ~8 live (TM, Dp) f32 temporaries in the body."""
    resident = 2 * (2 * d_pad * d_pad * 2      # two bf16 weight matrices
                    + 4 * d_pad * 4)           # four f32 param rows
    act = 2 * tm * d_pad * x_bytes             # x, double-buffered
    act += 2 * tm * d_pad * x_bytes            # out, double-buffered
    act += 8 * tm * d_pad * 4                  # live f32 temporaries
    return resident + act


def _pick_row_tile(n_rows, d_pad, x_bytes, budget):
    tm = 512                                   # cap per perf review
    while tm > 8 and _vmem_need(tm, d_pad, x_bytes) > budget:
        tm //= 2
    tm = max(8, min(tm, _round_up(n_rows, 8)))
    # >= 2 grid steps so megacore (v7x) can shard the row axis.
    if n_rows > 8:
        tm = min(tm, max(8, _round_up(pl.cdiv(n_rows, 2), 8)))
    # Prefer >= 8 steps for pipeline overlap, but keep the tile >= 128 rows.
    if n_rows >= 8 * 128:
        tm = min(tm, max(128, _round_up(pl.cdiv(n_rows, 8), 8)))
    return max(8, tm)


# --------------------------------------------------------------------------
# Wrapper
# --------------------------------------------------------------------------
def prepare_mlp_params(w1, b1, w2, b2, gamma, beta):
    """Pad to a 128-multiple feature dim and cast weights to bf16 ONCE
    (hoisted out of the per-call hot path)."""
    d = w1.shape[0]
    d_pad = _round_up(d, 128)
    pd = d_pad - d
    pad_w = (lambda w: jnp.pad(w, ((0, pd), (0, pd)))) if pd else (lambda w: w)
    pad_v = (lambda v: jnp.pad(v, (0, pd))) if pd else (lambda v: v)
    vec = lambda v: pad_v(v).reshape(1, d_pad).astype(jnp.float32)
    params = (pad_w(w1).astype(jnp.bfloat16), vec(b1),
              pad_w(w2).astype(jnp.bfloat16), vec(b2),
              vec(gamma), vec(beta))
    return {"d": d, "d_pad": d_pad, "params": params}


def _build_call(tm, d, d_pad, n_pad, out_dtype, vmem_limit, cost,
                single_buffer_consts):
    row_spec = pl.BlockSpec((tm, d_pad), lambda i: (i, 0))
    if single_buffer_consts:
        # Constant index_map -> never re-DMA'd; drop the useless 2nd buffer.
        const_spec = lambda shape: pl.BlockSpec(
            shape, lambda i: (0, 0), pipeline_mode=pl.Buffered(1))
    else:
        const_spec = lambda shape: pl.BlockSpec(shape, lambda i: (0, 0))
    w_spec = const_spec((d_pad, d_pad))
    v_spec = const_spec((1, d_pad))
    return pl.pallas_call(
        functools.partial(_mlp_kernel, d_real=d, d_pad=d_pad),
        out_shape=jax.ShapeDtypeStruct((n_pad, d_pad), out_dtype),
        grid=(n_pad // tm,),
        in_specs=[row_spec, w_spec, v_spec, w_spec, v_spec, v_spec, v_spec],
        out_specs=row_spec,
        compiler_params=pltpu.CompilerParams(
            dimension_semantics=("parallel",),   # megacore-shardable on v7x
            vmem_limit_bytes=vmem_limit),
        cost_estimate=cost,
    )


def mlp_block_prepared(x, prepared):
    d, d_pad = prepared["d"], prepared["d_pad"]
    params = prepared["params"]
    assert x.shape[-1] == d
    lead = x.shape[:-1]
    x2 = x.reshape(-1, d)
    N = x2.shape[0]
    x_bytes = jnp.dtype(x.dtype).itemsize

    budget = _vmem_budget_bytes()
    tm = _pick_row_tile(N, d_pad, x_bytes, budget)
    need = _vmem_need(tm, d_pad, x_bytes)
    if need > budget:
        # TODO(synk): K/N-tiled weight path for very large d (resident bf16
        # weights no longer fit VMEM, first on v7x's 64 MiB).
        raise NotImplementedError(
            f"resident-weight plan needs {need >> 20} MiB VMEM "
            f"(budget {budget >> 20} MiB); K/N-tiled path not implemented")
    vmem_limit = int(min(budget, max(32 * 2**20, 1.25 * need)))

    n_pad = _round_up(N, tm)
    if n_pad != N or d_pad != d:
        x2 = jnp.pad(x2, ((0, n_pad - N), (0, d_pad - d)))

    cost = pl.CostEstimate(
        flops=int(4 * n_pad * d_pad * d_pad),
        transcendentals=int(n_pad),
        bytes_accessed=int(2 * n_pad * d_pad * x_bytes
                           + 2 * d_pad * d_pad * 2 + 4 * d_pad * 4))

    try:
        out = _build_call(tm, d, d_pad, n_pad, x.dtype, vmem_limit, cost,
                          single_buffer_consts=True)(x2, *params)
    except Exception:
        # pl.Buffered(1) (single-buffered resident weights) not supported on
        # this jax version / lowering; fall back to default double buffering.
        out = _build_call(tm, d, d_pad, n_pad, x.dtype, vmem_limit, cost,
                          single_buffer_consts=False)(x2, *params)

    if n_pad != N or d_pad != d:
        out = out[:N, :d]
    return out.reshape(*lead, d)


def mlp_block(x, w1, b1, w2, b2, gamma, beta):
    """x: (B, S, d); w1/w2: (d, d) stored as x @ W.  Returns (B, S, d)."""
    return mlp_block_prepared(x, prepare_mlp_params(w1, b1, w2, b2, gamma, beta))


# --------------------------------------------------------------------------
# Reference + self-test
# --------------------------------------------------------------------------
def _reference(x, w1, b1, w2, b2, gamma, beta, matmul_dtype=jnp.float32):
    xm = x.astype(matmul_dtype)
    h = jnp.maximum(
        jnp.dot(xm, w1.astype(matmul_dtype),
                preferred_element_type=jnp.float32) + b1, 0.0)
    y = jnp.dot(h.astype(matmul_dtype), w2.astype(matmul_dtype),
                preferred_element_type=jnp.float32) + b2
    z = y + x
    mu = jnp.mean(z, axis=-1, keepdims=True)
    var = jnp.mean((z - mu) ** 2, axis=-1, keepdims=True)
    return (z - mu) / jnp.sqrt(var + 1e-5) * gamma + beta


if __name__ == "__main__":
    key = jax.random.PRNGKey(0)
    B, S, d = 2, 8, 32

    k_x, k_w1, k_b1, k_w2, k_b2 = jax.random.split(key, 5)
    x = jax.random.normal(k_x, (B, S, d), dtype=jnp.float32)

    bound = 1.0 / (d ** 0.5)
    w1 = jax.random.uniform(k_w1, (d, d), jnp.float32, -bound, bound)
    b1 = jax.random.uniform(k_b1, (d,), jnp.float32, -bound, bound)
    w2 = jax.random.uniform(k_w2, (d, d), jnp.float32, -bound, bound)
    b2 = jax.random.uniform(k_b2, (d,), jnp.float32, -bound, bound)
    gamma = jnp.ones((d,), jnp.float32)   # LayerNorm weight init
    beta = jnp.zeros((d,), jnp.float32)   # LayerNorm bias init

    # Padding / bf16 cast of the weights is hoisted out of the hot path.
    prepared = prepare_mlp_params(w1, b1, w2, b2, gamma, beta)
    out = jax.block_until_ready(mlp_block_prepared(x, prepared))
    assert out.shape == (B, S, d)

    # Tight check against a reference matching the kernel numerics (bf16 MXU
    # inputs, f32 accumulation), plus a loose sanity check against pure f32.
    ref_bf16 = _reference(x, w1, b1, w2, b2, gamma, beta, matmul_dtype=jnp.bfloat16)
    ref_f32 = _reference(x, w1, b1, w2, b2, gamma, beta, matmul_dtype=jnp.float32)
    assert jnp.allclose(out, ref_bf16, atol=1e-4, rtol=1e-4), "mismatch vs bf16 reference"
    assert jnp.allclose(out, ref_f32, atol=5e-2, rtol=5e-2), "mismatch vs f32 reference"

    print("KERNEL_OK")
</pallas_src>

<mosaic_0001>
module attributes {stable_mosaic.version = 11 : i64} {
  func.func @_mlp_kernel(%arg0: i32, %arg1: memref<8x128xf32, #tpu.memory_space<vmem>>, %arg2: memref<128x128xbf16, #tpu.memory_space<vmem>>, %arg3: memref<1x128xf32, #tpu.memory_space<vmem>>, %arg4: memref<128x128xbf16, #tpu.memory_space<vmem>>, %arg5: memref<1x128xf32, #tpu.memory_space<vmem>>, %arg6: memref<1x128xf32, #tpu.memory_space<vmem>>, %arg7: memref<1x128xf32, #tpu.memory_space<vmem>>, %arg8: memref<8x128xf32, #tpu.memory_space<vmem>>) attributes {dimension_semantics = [#tpu.dimension_semantics<parallel>], iteration_bounds = array<i64: 2>, scalar_prefetch = 0 : i64, scratch_operands = 0 : i64, tpu.core_type = #tpu.core_type<tc>, window_params = [{transform_indices = @transform_0, window_bounds = array<i64: 8, 128>}, {pipeline_mode = #tpu.pipeline_mode<synchronous>, transform_indices = @transform_1, window_bounds = array<i64: 128, 128>}, {pipeline_mode = #tpu.pipeline_mode<synchronous>, transform_indices = @transform_2, window_bounds = array<i64: 1, 128>}, {pipeline_mode = #tpu.pipeline_mode<synchronous>, transform_indices = @transform_3, window_bounds = array<i64: 128, 128>}, {pipeline_mode = #tpu.pipeline_mode<synchronous>, transform_indices = @transform_4, window_bounds = array<i64: 1, 128>}, {pipeline_mode = #tpu.pipeline_mode<synchronous>, transform_indices = @transform_5, window_bounds = array<i64: 1, 128>}, {pipeline_mode = #tpu.pipeline_mode<synchronous>, transform_indices = @transform_6, window_bounds = array<i64: 1, 128>}, {transform_indices = @transform_7, window_bounds = array<i64: 8, 128>}]} {
    %c0 = arith.constant 0 : index
    %c0_0 = arith.constant 0 : index
    %0 = vector.load %arg1[%c0, %c0_0] : memref<8x128xf32, #tpu.memory_space<vmem>>, vector<8x128xf32>
    %1 = arith.truncf %0 : vector<8x128xf32> to vector<8x128xbf16>
    %c0_1 = arith.constant 0 : index
    %c0_2 = arith.constant 0 : index
    %2 = vector.load %arg2[%c0_1, %c0_2] : memref<128x128xbf16, #tpu.memory_space<vmem>>, vector<128x128xbf16>
    %cst = arith.constant dense<0.000000e+00> : vector<8x128xf32>
    %3 = tpu.matmul %1, %2, %cst {dimension_numbers = #tpu.dot_dimension_numbers<[1], [0], [0], [1], [0, 0, 1, 1], [], []>} : vector<8x128xbf16>, vector<128x128xbf16>, vector<8x128xf32> -> vector<8x128xf32>
    %c0_3 = arith.constant 0 : index
    %c0_4 = arith.constant 0 : index
    %4 = vector.load %arg3[%c0_3, %c0_4] : memref<1x128xf32, #tpu.memory_space<vmem>>, vector<1x128xf32>
    %5 = vector.broadcast %4 : vector<1x128xf32> to vector<8x128xf32>
    %6 = arith.addf %3, %5 : vector<8x128xf32>
    %cst_5 = arith.constant 0.000000e+00 : f32
    %7 = vector.broadcast %cst_5 : f32 to vector<8x128xf32>
    %8 = arith.maximumf %6, %7 : vector<8x128xf32>
    %9 = arith.truncf %8 : vector<8x128xf32> to vector<8x128xbf16>
    %c0_6 = arith.constant 0 : index
    %c0_7 = arith.constant 0 : index
    %10 = vector.load %arg4[%c0_6, %c0_7] : memref<128x128xbf16, #tpu.memory_space<vmem>>, vector<128x128xbf16>
    %cst_8 = arith.constant dense<0.000000e+00> : vector<8x128xf32>
    %11 = tpu.matmul %9, %10, %cst_8 {dimension_numbers = #tpu.dot_dimension_numbers<[1], [0], [0], [1], [0, 0, 1, 1], [], []>} : vector<8x128xbf16>, vector<128x128xbf16>, vector<8x128xf32> -> vector<8x128xf32>
    %c0_9 = arith.constant 0 : index
    %c0_10 = arith.constant 0 : index
    %12 = vector.load %arg5[%c0_9, %c0_10] : memref<1x128xf32, #tpu.memory_space<vmem>>, vector<1x128xf32>
    %13 = vector.broadcast %12 : vector<1x128xf32> to vector<8x128xf32>
    %14 = arith.addf %11, %13 : vector<8x128xf32>
    %15 = arith.addf %14, %0 : vector<8x128xf32>
    %cst_11 = arith.constant dense<0.000000e+00> : vector<8xf32>
    %16 = vector.multi_reduction <add>, %15, %cst_11 [1] : vector<8x128xf32> to vector<8xf32>
    %17 = vector.shape_cast %16 : vector<8xf32> to vector<8x1xf32>
    %cst_12 = arith.constant 3.125000e-02 : f32
    %18 = vector.broadcast %cst_12 : f32 to vector<8x1xf32>
    %19 = arith.mulf %17, %18 : vector<8x1xf32>
    %20 = vector.broadcast %19 : vector<8x1xf32> to vector<8x128xf32>
    %21 = arith.subf %15, %20 : vector<8x128xf32>
    %22 = tpu.iota {dimensions = array<i32: 1>} : vector<1x128xi32>
    %c32_i32 = arith.constant 32 : i32
    %23 = vector.broadcast %c32_i32 : i32 to vector<1x128xi32>
    %24 = arith.cmpi slt, %22, %23 : vector<1x128xi32>
    %cst_13 = arith.constant 0.000000e+00 : f32
    %25 = vector.shape_cast %24 : vector<1x128xi1> to vector<1x128xi1>
    %26 = vector.broadcast %25 : vector<1x128xi1> to vector<8x128xi1>
    %27 = vector.broadcast %cst_13 : f32 to vector<8x128xf32>
    %28 = arith.select %26, %21, %27 : vector<8x128xi1>, vector<8x128xf32>
    %29 = arith.mulf %28, %28 : vector<8x128xf32>
    %cst_14 = arith.constant dense<0.000000e+00> : vector<8xf32>
    %30 = vector.multi_reduction <add>, %29, %cst_14 [1] : vector<8x128xf32> to vector<8xf32>
    %31 = vector.shape_cast %30 : vector<8xf32> to vector<8x1xf32>
    %cst_15 = arith.constant 3.125000e-02 : f32
    %32 = vector.broadcast %cst_15 : f32 to vector<8x1xf32>
    %33 = arith.mulf %31, %32 : vector<8x1xf32>
    %cst_16 = arith.constant 9.99999974E-6 : f32
    %34 = vector.broadcast %cst_16 : f32 to vector<8x1xf32>
    %35 = arith.addf %33, %34 : vector<8x1xf32>
    %36 = math.rsqrt %35 : vector<8x1xf32>
    %37 = vector.broadcast %36 : vector<8x1xf32> to vector<8x128xf32>
    %38 = arith.mulf %28, %37 : vector<8x128xf32>
    %c0_17 = arith.constant 0 : index
    %c0_18 = arith.constant 0 : index
    %39 = vector.load %arg6[%c0_17, %c0_18] : memref<1x128xf32, #tpu.memory_space<vmem>>, vector<1x128xf32>
    %40 = vector.broadcast %39 : vector<1x128xf32> to vector<8x128xf32>
    %41 = arith.mulf %38, %40 : vector<8x128xf32>
    %c0_19 = arith.constant 0 : index
    %c0_20 = arith.constant 0 : index
    %42 = vector.load %arg7[%c0_19, %c0_20] : memref<1x128xf32, #tpu.memory_space<vmem>>, vector<1x128xf32>
    %43 = vector.broadcast %42 : vector<1x128xf32> to vector<8x128xf32>
    %44 = arith.addf %41, %43 : vector<8x128xf32>
    %c0_21 = arith.constant 0 : index
    %c0_22 = arith.constant 0 : index
    %45 = vector.load %arg8[%c0_21, %c0_22] : memref<8x128xf32, #tpu.memory_space<vmem>>, vector<8x128xf32>
    tpu.vector_store %arg8[%c0_21, %c0_22], %44 {strides = array<i32>} : memref<8x128xf32, #tpu.memory_space<vmem>>, vector<8x128xf32>,
    return
  }
  func.func @transform_0(%arg0: i32) -> (i32, i32) {
    %c0_i32 = arith.constant 0 : i32
    %c0_i32_0 = arith.constant 0 : i32
    return %arg0, %c0_i32 : i32, i32
  }
  func.func @transform_1(%arg0: i32) -> (i32, i32) {
    %c0_i32 = arith.constant 0 : i32
    %c0_i32_0 = arith.constant 0 : i32
    %c0_i32_1 = arith.constant 0 : i32
    return %c0_i32, %c0_i32_0 : i32, i32
  }
  func.func @transform_2(%arg0: i32) -> (i32, i32) {
    %c0_i32 = arith.constant 0 : i32
    %c0_i32_0 = arith.constant 0 : i32
    %c0_i32_1 = arith.constant 0 : i32
    return %c0_i32, %c0_i32_0 : i32, i32
  }
  func.func @transform_3(%arg0: i32) -> (i32, i32) {
    %c0_i32 = arith.constant 0 : i32
    %c0_i32_0 = arith.constant 0 : i32
    %c0_i32_1 = arith.constant 0 : i32
    return %c0_i32, %c0_i32_0 : i32, i32
  }
  func.func @transform_4(%arg0: i32) -> (i32, i32) {
    %c0_i32 = arith.constant 0 : i32
    %c0_i32_0 = arith.constant 0 : i32
    %c0_i32_1 = arith.constant 0 : i32
    return %c0_i32, %c0_i32_0 : i32, i32
  }
  func.func @transform_5(%arg0: i32) -> (i32, i32) {
    %c0_i32 = arith.constant 0 : i32
    %c0_i32_0 = arith.constant 0 : i32
    %c0_i32_1 = arith.constant 0 : i32
    return %c0_i32, %c0_i32_0 : i32, i32
  }
  func.func @transform_6(%arg0: i32) -> (i32, i32) {
    %c0_i32 = arith.constant 0 : i32
    %c0_i32_0 = arith.constant 0 : i32
    %c0_i32_1 = arith.constant 0 : i32
    return %c0_i32, %c0_i32_0 : i32, i32
  }
  func.func @transform_7(%arg0: i32) -> (i32, i32) {
    %c0_i32 = arith.constant 0 : i32
    %c0_i32_0 = arith.constant 0 : i32
    return %arg0, %c0_i32 : i32, i32
  }
}

module attributes {stable_mosaic.version = 11 : i64} {
  func.func @_mlp_kernel(%arg0: i32, %arg1: memref<8x128xf32, #tpu.memory_space<vmem>>, %arg2: memref<128x128xbf16, #tpu.memory_space<vmem>>, %arg3: memref<1x128xf32, #tpu.memory_space<vmem>>, %arg4: memref<128x128xbf16, #tpu.memory_space<vmem>>, %arg5: memref<1x128xf32, #tpu.memory_space<vmem>>, %arg6: memref<1x128xf32, #tpu.memory_space<vmem>>, %arg7: memref<1x128xf32, #tpu.memory_space<vmem>>, %arg8: memref<8x128xf32, #tpu.memory_space<vmem>>) attributes {dimension_semantics = [#tpu.dimension_semantics<parallel>], iteration_bounds = array<i64: 2>, scalar_prefetch = 0 : i64, scratch_operands = 0 : i64, tpu.core_type = #tpu.core_type<tc>, window_params = [{transform_indices = @transform_0, window_bounds = array<i64: 8, 128>}, {pipeline_mode = #tpu.pipeline_mode<synchronous>, transform_indices = @transform_1, window_bounds = array<i64: 128, 128>}, {pipeline_mode = #tpu.pipeline_mode<synchronous>, transform_indices = @transform_2, window_bounds = array<i64: 1, 128>}, {pipeline_mode = #tpu.pipeline_mode<synchronous>, transform_indices = @transform_3, window_bounds = array<i64: 128, 128>}, {pipeline_mode = #tpu.pipeline_mode<synchronous>, transform_indices = @transform_4, window_bounds = array<i64: 1, 128>}, {pipeline_mode = #tpu.pipeline_mode<synchronous>, transform_indices = @transform_5, window_bounds = array<i64: 1, 128>}, {pipeline_mode = #tpu.pipeline_mode<synchronous>, transform_indices = @transform_6, window_bounds = array<i64: 1, 128>}, {transform_indices = @transform_7, window_bounds = array<i64: 8, 128>}]} {
    %c0 = arith.constant 0 : index
    %c0_0 = arith.constant 0 : index
    %0 = vector.load %arg1[%c0, %c0_0] : memref<8x128xf32, #tpu.memory_space<vmem>>, vector<8x128xf32>
    %1 = arith.truncf %0 : vector<8x128xf32> to vector<8x128xbf16>
    %c0_1 = arith.constant 0 : index
    %c0_2 = arith.constant 0 : index
    %2 = vector.load %arg2[%c0_1, %c0_2] : memref<128x128xbf16, #tpu.memory_space<vmem>>, vector<128x128xbf16>
    %cst = arith.constant dense<0.000000e+00> : vector<8x128xf32>
    %3 = tpu.matmul %1, %2, %cst {dimension_numbers = #tpu.dot_dimension_numbers<[1], [0], [0], [1], [0, 0, 1, 1], [], []>} : vector<8x128xbf16>, vector<128x128xbf16>, vector<8x128xf32> -> vector<8x128xf32>
    %c0_3 = arith.constant 0 : index
    %c0_4 = arith.constant 0 : index
    %4 = vector.load %arg3[%c0_3, %c0_4] : memref<1x128xf32, #tpu.memory_space<vmem>>, vector<1x128xf32>
    %5 = vector.broadcast %4 : vector<1x128xf32> to vector<8x128xf32>
    %6 = arith.addf %3, %5 : vector<8x128xf32>
    %cst_5 = arith.constant 0.000000e+00 : f32
    %7 = vector.broadcast %cst_5 : f32 to vector<8x128xf32>
    %8 = arith.maximumf %6, %7 : vector<8x128xf32>
    %9 = arith.truncf %8 : vector<8x128xf32> to vector<8x128xbf16>
    %c0_6 = arith.constant 0 : index
    %c0_7 = arith.constant 0 : index
    %10 = vector.load %arg4[%c0_6, %c0_7] : memref<128x128xbf16, #tpu.memory_space<vmem>>, vector<128x128xbf16>
    %cst_8 = arith.constant dense<0.000000e+00> : vector<8x128xf32>
    %11 = tpu.matmul %9, %10, %cst_8 {dimension_numbers = #tpu.dot_dimension_numbers<[1], [0], [0], [1], [0, 0, 1, 1], [], []>} : vector<8x128xbf16>, vector<128x128xbf16>, vector<8x128xf32> -> vector<8x128xf32>
    %c0_9 = arith.constant 0 : index
    %c0_10 = arith.constant 0 : index
    %12 = vector.load %arg5[%c0_9, %c0_10] : memref<1x128xf32, #tpu.memory_space<vmem>>, vector<1x128xf32>
    %13 = vector.broadcast %12 : vector<1x128xf32> to vector<8x128xf32>
    %14 = arith.addf %11, %13 : vector<8x128xf32>
    %15 = arith.addf %14, %0 : vector<8x128xf32>
    %cst_11 = arith.constant dense<0.000000e+00> : vector<8xf32>
    %16 = vector.multi_reduction <add>, %15, %cst_11 [1] : vector<8x128xf32> to vector<8xf32>
    %17 = vector.shape_cast %16 : vector<8xf32> to vector<8x1xf32>
    %cst_12 = arith.constant 3.125000e-02 : f32
    %18 = vector.broadcast %cst_12 : f32 to vector<8x1xf32>
    %19 = arith.mulf %17, %18 : vector<8x1xf32>
    %20 = vector.broadcast %19 : vector<8x1xf32> to vector<8x128xf32>
    %21 = arith.subf %15, %20 : vector<8x128xf32>
    %22 = tpu.iota {dimensions = array<i32: 1>} : vector<1x128xi32>
    %c32_i32 = arith.constant 32 : i32
    %23 = vector.broadcast %c32_i32 : i32 to vector<1x128xi32>
    %24 = arith.cmpi slt, %22, %23 : vector<1x128xi32>
    %cst_13 = arith.constant 0.000000e+00 : f32
    %25 = vector.shape_cast %24 : vector<1x128xi1> to vector<1x128xi1>
    %26 = vector.broadcast %25 : vector<1x128xi1> to vector<8x128xi1>
    %27 = vector.broadcast %cst_13 : f32 to vector<8x128xf32>
    %28 = arith.select %26, %21, %27 : vector<8x128xi1>, vector<8x128xf32>
    %29 = arith.mulf %28, %28 : vector<8x128xf32>
    %cst_14 = arith.constant dense<0.000000e+00> : vector<8xf32>
    %30 = vector.multi_reduction <add>, %29, %cst_14 [1] : vector<8x128xf32> to vector<8xf32>
    %31 = vector.shape_cast %30 : vector<8xf32> to vector<8x1xf32>
    %cst_15 = arith.constant 3.125000e-02 : f32
    %32 = vector.broadcast %cst_15 : f32 to vector<8x1xf32>
    %33 = arith.mulf %31, %32 : vector<8x1xf32>
    %cst_16 = arith.constant 9.99999974E-6 : f32
    %34 = vector.broadcast %cst_16 : f32 to vector<8x1xf32>
    %35 = arith.addf %33, %34 : vector<8x1xf32>
    %36 = math.rsqrt %35 : vector<8x1xf32>
    %37 = vector.broadcast %36 : vector<8x1xf32> to vector<8x128xf32>
    %38 = arith.mulf %28, %37 : vector<8x128xf32>
    %c0_17 = arith.constant 0 : index
    %c0_18 = arith.constant 0 : index
    %39 = vector.load %arg6[%c0_17, %c0_18] : memref<1x128xf32, #tpu.memory_space<vmem>>, vector<1x128xf32>
    %40 = vector.broadcast %39 : vector<1x128xf32> to vector<8x128xf32>
    %41 = arith.mulf %38, %40 : vector<8x128xf32>
    %c0_19 = arith.constant 0 : index
    %c0_20 = arith.constant 0 : index
    %42 = vector.load %arg7[%c0_19, %c0_20] : memref<1x128xf32, #tpu.memory_space<vmem>>, vector<1x128xf32>
    %43 = vector.broadcast %42 : vector<1x128xf32> to vector<8x128xf32>
    %44 = arith.addf %41, %43 : vector<8x128xf32>
    %c0_21 = arith.constant 0 : index
    %c0_22 = arith.constant 0 : index
    %45 = vector.load %arg8[%c0_21, %c0_22] : memref<8x128xf32, #tpu.memory_space<vmem>>, vector<8x128xf32>
    tpu.vector_store %arg8[%c0_21, %c0_22], %44 {strides = array<i32>} : memref<8x128xf32, #tpu.memory_space<vmem>>, vector<8x128xf32>,
    return
  }
  func.func @transform_0(%arg0: i32) -> (i32, i32) {
    %c0_i32 = arith.constant 0 : i32
    %c0_i32_0 = arith.constant 0 : i32
    return %arg0, %c0_i32 : i32, i32
  }
  func.func @transform_1(%arg0: i32) -> (i32, i32) {
    %c0_i32 = arith.constant 0 : i32
    %c0_i32_0 = arith.constant 0 : i32
    %c0_i32_1 = arith.constant 0 : i32
    return %c0_i32, %c0_i32_0 : i32, i32
  }
  func.func @transform_2(%arg0: i32) -> (i32, i32) {
    %c0_i32 = arith.constant 0 : i32
    %c0_i32_0 = arith.constant 0 : i32
    %c0_i32_1 = arith.constant 0 : i32
    return %c0_i32, %c0_i32_0 : i32, i32
  }
  func.func @transform_3(%arg0: i32) -> (i32, i32) {
    %c0_i32 = arith.constant 0 : i32
    %c0_i32_0 = arith.constant 0 : i32
    %c0_i32_1 = arith.constant 0 : i32
    return %c0_i32, %c0_i32_0 : i32, i32
  }
  func.func @transform_4(%arg0: i32) -> (i32, i32) {
    %c0_i32 = arith.constant 0 : i32
    %c0_i32_0 = arith.constant 0 : i32
    %c0_i32_1 = arith.constant 0 : i32
    return %c0_i32, %c0_i32_0 : i32, i32
  }
  func.func @transform_5(%arg0: i32) -> (i32, i32) {
    %c0_i32 = arith.constant 0 : i32
    %c0_i32_0 = arith.constant 0 : i32
    %c0_i32_1 = arith.constant 0 : i32
    return %c0_i32, %c0_i32_0 : i32, i32
  }
  func.func @transform_6(%arg0: i32) -> (i32, i32) {
    %c0_i32 = arith.constant 0 : i32
    %c0_i32_0 = arith.constant 0 : i32
    %c0_i32_1 = arith.constant 0 : i32
    return %c0_i32, %c0_i32_0 : i32, i32
  }
  func.func @transform_7(%arg0: i32) -> (i32, i32) {
    %c0_i32 = arith.constant 0 : i32
    %c0_i32_0 = arith.constant 0 : i32
    return %arg0, %c0_i32 : i32, i32
  }
}

</mosaic_0001>

<bundles_post_ra>
// kernel: tpu_custom_call.1
= control target key start
LH: loop header
LB: loop body
LE: loop exit
PB: predicated region body
PF: predicated region fallthrough
CT: control target
= control target key end

     0   :  { %12 = vsyncpa [#allocation3], 0  ;;  %s1325_s0 = inlined_call_operand.hbm [shape: f32[16,128], index: 0, kind: input, shape index: {}]   ;;  %s1326_s1 = inlined_call_operand.hbm [shape: bf16[128,128], index: 1, kind: input, shape index: {}]   ;;  %s1327_s2 = inlined_call_operand.vmem [shape: f32[1,128], index: 2, kind: input, shape index: {}]   ;;  %s1328_s3 = inlined_call_operand.hbm [shape: bf16[128,128], index: 3, kind: input, shape index: {}]   ;;  %s1329_s4 = inlined_call_operand.vmem [shape: f32[1,128], index: 4, kind: input, shape index: {}]   ;;  %s1330_s5 = inlined_call_operand.vmem [shape: f32[1,128], index: 5, kind: input, shape index: {}]   ;;  %s1331_s6 = inlined_call_operand.vmem [shape: f32[1,128], index: 6, kind: input, shape index: {}]   ;;  %s1332_s7 = inlined_call_operand.hbm [shape: f32[16,128], index: 7, kind: output, shape index: {}]  }
   0x1   :  { %14 = vsyncpa [#allocation3 + $0x1], 0 }
   0x2   :  { %15 = vsyncpa [#allocation6], 0 }
   0x3   :  { %16 = vsyncpa [#allocation4], 0 }
   0x4   :  { %18 = vsyncpa [#allocation4 + $0x1], 0  ;;  %s1077_s24 = smov 0   ;;  %s1079_s25 = smov 0  }
   0x5   :  { %s1081_s26 = smov 0   ;;  %s1083_s27 = smov 0  }
   0x6 LB: > { %s1098_s28 = sadd.s32 4294967295, %s1027_s27   ;;  %s688_s29 = sadd.s32 4294967294, %s1027_s27   ;;  %s1027_s27 = sphi %s1083_s27, %s1352_s27   ;;  %s1023_s26 = sphi %s1081_s26, %s1351_s26   ;;  %s1019_s25 = sphi %s1079_s25, %s1350_s25   ;;  %s1015_s24 = sphi %s1077_s24, %s1349_s24  }
   0x7   : > { %p44_p0 = scmp.ne.s32.totalorder %s1019_s25, %s1015_s24  ;;  %p1333_p1 = scmp.eq.s32.totalorder %s1098_s28, 0 }
   0x8   : > { %p200_p3 = scmp.eq.s32.totalorder %s688_s29, 1  ;;  %p689_p5 = scmp.ge.s32.totalorder %s1027_s27, 1 }
   0x9   : > { %p1107_p4 = por %p1333_p1, %p44_p0  ;;  %p207_p7 = scmp.lt.s32.totalorder %s1027_s27, 3 }
   0xa   : > { %p1112_p6 = por %p200_p3, %p44_p0  ;;  %s1029_s10 = smov [#allocation5]  }
   0xb   : > { %s1336_s30 = scalar_select %p1107_p4, 1, 0 }
   0xc   : > { %s1337_s8 = scalar_select %p1112_p6, 1, 0 }
   0xd   : > { %p1117_p8 = pnand %p689_p5, %p207_p7  ;;  %s219_s11 = sshll.u32 %s1029_s10, 4  ;;  %s1121_s11 = int_to_ptr.vmem [resolvable:$true] %s219_s11 }
   0xe   : > { %s1030_s13 = smov [#allocation7]   ;;  %s871_s17 = scalar_lea.hbm %s1326_s1, 1024 }
   0xf   : > { %p794_p9 = pneg %p1117_p8  ;;  %s235_s14 = sshll.u32 %s1030_s13, 4  ;;  %s1132_s14 = int_to_ptr.vmem [resolvable:$true] %s235_s14 }
  0x10   : > { %p872_p12 = scmp.ne.s32.totalorder %s1326_s1, %s871_s17  ;;  %p878_p5 = scmp.lt.u32.totalorder %s871_s17, %s1326_s1 }
  0x11   : > { %p1128_p11 = pnand %p794_p9, %p1333_p1 }
  0x13   : > { %p873_p13 = pneg %p1128_p11 }
  0x15   : > { %p874_p0 = pnand %p873_p13, %p872_p12 }
  0x17   : > { %p875_p3 = pneg %p874_p0 }
  0x19   : > { %p880_p7 = pnand %p878_p5, %p875_p3 }
  0x1b   : > { %883 = shalt.err (!%p880_p7)
}
  0x1c   : > { %s884_s22 = scalar_lea.vmem %s1121_s11, 1024  ;;  %p892_p2 = scmp.lt.s32.totalorder %s1121_s11, %s1121_s11 }
  0x1d   : > { %p885_p9 = scmp.ne.s32.totalorder %s1121_s11, %s884_s22  ;;  %p893_p12 = scmp.lt.s32.totalorder %s884_s22, %s884_s22 }
  0x1f   : > { %p887_p10 = pnand %p885_p9, %p873_p13  ;;  %p894_p0 = por %p893_p12, %p892_p2 }
  0x21   : > { %p888_p1 = pneg %p887_p10 }
  0x23   : > { %p895_p6 = pnand %p894_p0, %p888_p1 }
  0x25   : > { %898 = shalt.err (!%p895_p6)
}
  0x26   : > { %s1031_s23 = smov 64   ;;  %s1032_s29 = smov 4  }
  0x27   : > { %797 = dma.hbm_to_vmem [thread:$0]  (!%p1128_p11), %s1326_s1, 1024, %s1121_s11, [#allocation6], %s1031_s23, %s1031_s23, %s1032_s29  }
  0x28   : > { %s899_s17 = scalar_lea.hbm %s1328_s3, 1024 }
  0x29   : > { %p900_p2 = scmp.ne.s32.totalorder %s1328_s3, %s899_s17  ;;  %p906_p10 = scmp.lt.u32.totalorder %s899_s17, %s1328_s3 }
  0x2b   : > { %p902_p1 = pnand %p900_p2, %p873_p13 }
  0x2d   : > { %p903_p6 = pneg %p902_p1 }
  0x2f   : > { %p908_p3 = pnand %p906_p10, %p903_p6 }
  0x31   : > { %911 = shalt.err (!%p908_p3)
}
  0x32   : > { %s912_s11 = scalar_lea.vmem %s1132_s14, 1024  ;;  %p920_p12 = scmp.lt.s32.totalorder %s1132_s14, %s1132_s14 }
  0x33   : > { %p913_p5 = scmp.ne.s32.totalorder %s1132_s14, %s912_s11  ;;  %p921_p0 = scmp.lt.s32.totalorder %s912_s11, %s912_s11 }
  0x35   : > { %p915_p7 = pnand %p913_p5, %p873_p13  ;;  %p922_p2 = por %p921_p0, %p920_p12 }
  0x37   : > { %p916_p9 = pneg %p915_p7 }
  0x39   : > { %p923_p1 = pnand %p922_p2, %p916_p9 }
  0x3b   : > { %926 = shalt.err (!%p923_p1)
}
  0x3c   : > { %800 = dma.hbm_to_vmem [thread:$0]  (!%p1128_p11), %s1328_s3, 1024, %s1132_s14, [#allocation6], %s1031_s23, %s1031_s23, %s1032_s29  }
  0x3d   : > { %s1187_s13 = sadd.s32 1, %s1027_s27   ;;  %s31_s12 = sadd.s32 1, %s1023_s26 }
  0x3e   : > { %s28_s15 = ssub.s32 %s1027_s27, %s1187_s13  ;;  %p38_p13 = scmp.ne.s32.totalorder %s1023_s26, %s1019_s25 }
  0x3f   : > { %p29_p6 = scmp.eq.s32.totalorder %s28_s15, 0  ;;  %p39_p10 = scmp.eq.s32.totalorder %s1027_s27, 0 }
  0x40   : > { %p1340_p3 = scmp.eq.s32.totalorder %s1098_s28, 1  ;;  %p811_p7 = scmp.lt.s32.totalorder %s1027_s27, 2 }
  0x41   : > { %s1203_s17 = scalar_select %p29_p6, %s1023_s26, %s31_s12  }
  0x42   : > { %p1197_p5 = por %p1340_p3, %p38_p13  ;;  %p40_p9 = por %p39_p10, %p38_p13 }
  0x43   : > { %s258_s18 = sand.u32 1, %s1023_s26   ;;  %s694_s14 = sshll.u32 %s1027_s27, 7 }
  0x44   : > { %s1341_s16 = scalar_select %p1197_p5, 1, 0 }
  0x45   : > { %s693_s19 = sshll.u32 %s258_s18, 3  ;;  %s1210_s20 = scalar_lea.hbm %s1325_s0, %s694_s14 }
  0x46   : > { %s262_s21 = scalar_lea.vmem [#allocation2], %s693_s19  ;;  %p1214_p11 = pnand %p811_p7, %p40_p9 }
  0x47   : > { %s269_s11 = sshll.u32 %s262_s21, 4  ;;  %s259_s10 = scalar_lea.sflag [#allocation3], %s258_s18  ;;  %s1212_s11 = int_to_ptr.vmem [resolvable:$true] %s269_s11 }
  0x48   : > { %s927_s12 = scalar_lea.hbm %s1210_s20, 128  ;;  %p929_p0 = pneg %p1214_p11 }
  0x49   : > { %p928_p12 = scmp.ne.s32.totalorder %s1210_s20, %s927_s12  ;;  %s932_s14 = scalar_lea.hbm %s1325_s0, 256 }
  0x4a   : > { %p933_p13 = scmp.lt.u32.totalorder %s1210_s20, %s1325_s0  ;;  %p934_p6 = scmp.lt.u32.totalorder %s932_s14, %s927_s12 }
  0x4b   : > { %p930_p2 = pnand %p929_p0, %p928_p12  ;;  %p936_p3 = scmp.lt.u32.totalorder %s927_s12, %s1210_s20 }
  0x4c   : > { %p935_p10 = por %p934_p6, %p933_p13 }
  0x4d   : > { %p931_p1 = pneg %p930_p2 }
  0x4e   : > { %p937_p7 = por %p936_p3, %p935_p10 }
  0x50   : > { %p938_p9 = pnand %p937_p7, %p931_p1 }
  0x52   : > { %941 = shalt.err (!%p938_p9)
}
  0x53   : > { %s942_s18 = scalar_lea.vmem %s1212_s11, 128  ;;  %s1033_s21 = smov [#allocation2]  }
  0x54   : > { %p943_p12 = scmp.ne.s32.totalorder %s1212_s11, %s942_s18  ;;  %s947_s15 = sshll.u32 %s1033_s21, 4  ;;  %s948_s15 = int_to_ptr.vmem [resolvable:$false] %s947_s15 }
  0x55   : > { %s949_s19 = scalar_lea.vmem %s948_s15, 256  ;;  %p950_p4 = scmp.lt.s32.totalorder %s1212_s11, %s948_s15 }
  0x56   : > { %p945_p2 = pnand %p943_p12, %p929_p0  ;;  %p951_p13 = scmp.lt.s32.totalorder %s949_s19, %s942_s18 }
  0x58   : > { %p946_p5 = pneg %p945_p2  ;;  %p952_p6 = por %p951_p13, %p950_p4 }
  0x5a   : > { %p953_p10 = pnand %p952_p6, %p946_p5 }
  0x5c   : > { %956 = shalt.err (!%p953_p10)
}
  0x5d   : > { %804 = dma.hbm_to_vmem [thread:$0]  (!%p1214_p11), %s1210_s20, 128, %s1212_s11, %s259_s10  }
  0x5e   : > { %278 = sbr.rel (%p1117_p8) target bundleno = 899 (0x383), region = 48  ;;  %s1246_s12 = sand.u32 (!%p1117_p8), 1, %s1019_s25  }
  0x5f   : > { %s696_s14 = sshll.u32 (!%p1117_p8), %s1246_s12, 3  ;;  %s281_s23 = scalar_lea.sflag (!%p1117_p8), [#allocation3], %s1246_s12 }
  0x60   : > { %s1252_s29 = scalar_lea.vmem (!%p1117_p8), [#allocation2], %s696_s14  ;;  %p1343_p4 = scmp.ne.s32.totalorder (!%p1117_p8), %s1336_s30, 0 }
  0x65   : > { %1002 = dma.done.wait (%p1343_p4), %s281_s23, 128  }
  0x66   : > { %1004 = vsyncadd (%p1343_p4), %s281_s23, 4294967168  ;;  %p1344_p5 = scmp.eq.s32.totalorder %s1098_s28, 0 }
  0x68   : > { %1006 = dma.done.wait (%p1344_p5), [#allocation6], 2048   ;;  %p1345_p8 = pmov %p1344_p5 }
  0x69   : > { %v1034_v0 = vmov 0.0   ;;  %vm1035_vm0 = vmmov 0   ;;  %v853_v1 = vld [vmem:[#allocation5] sm:$0xff]   ;;  %v854_v2 = vld [vmem:[#allocation5 + $0x8] sm:$0xff]   ;;  %v855_v3 = vld [vmem:[#allocation5 + $0x10] sm:$0xff]   ;;  %v555_v34 = vlaneseq  ;;  %s721_s15 = sshll.u32 %s1098_s28, 7 }
  0x6a   : > { %1008 = vsyncadd (%p1345_p8), [#allocation6], 4294965248  ;;  %742 = vmatprep.subr.bf16.mxu0 %v1034_v0  ;;  %758 = vmatprep.mubr.msk.bf16.mxu0 %vm1035_vm0, %v1034_v0  ;;  %v861_v4 = vld [vmem:[#allocation7] sm:$0xff]   ;;  %v856_v5 = vld [vmem:[#allocation5 + $0x18] sm:$0xff]   ;;  %s322_s19 = scalar_lea.vmem [#allocation8], %s696_s14  ;;  %s1281_s9 = scalar_lea.hbm %s1332_s7, %s721_s15 }
  0x6b   : > { %762 = vmatprep.subr.bf16.mxu1 %v1034_v0  ;;  %778 = vmatprep.mubr.msk.bf16.mxu1 %vm1035_vm0, %v1034_v0  ;;  %v862_v6 = vld [vmem:[#allocation7 + $0x8] sm:$0xff]   ;;  %v857_v7 = vld [vmem:[#allocation5 + $0x20] sm:$0xff]   ;;  %v863_v8 = vld [vmem:[#allocation7 + $0x10] sm:$0xff]   ;;  %v556_v35 = vand.u32 127, %v555_v34  ;;  %s599_s23 = sshll.u32 %s322_s19, 4  ;;  %s586_s20 = scalar_lea.sflag [#allocation4], %s1246_s12  ;;  %s1283_s23 = int_to_ptr.vmem [resolvable:$true] %s599_s23 }
  0x6c   : > { %743 = vmatpush3.bf16.msra.mxu0 %v853_v1  ;;  %763 = vmatpush3.bf16.msra.mxu1 %v861_v4  ;;  %v858_v9 = vld [vmem:[#allocation5 + $0x28] sm:$0xff]   ;;  %v864_v10 = vld [vmem:[#allocation7 + $0x18] sm:$0xff]   ;;  %v859_v11 = vld [vmem:[#allocation5 + $0x30] sm:$0xff]   ;;  %s957_s11 = scalar_lea.vmem %s1283_s23, 128  ;;  %p1346_p0 = scmp.ne.s32.totalorder %s1341_s16, 0 }
  0x6d   : > { %744 = vmatprep.subr.bf16.mxu0 %v1034_v0  ;;  %764 = vmatprep.subr.bf16.mxu1 %v1034_v0  ;;  %v865_v12 = vld [vmem:[#allocation7 + $0x20] sm:$0xff]   ;;  %v860_v13 = vld [vmem:[#allocation5 + $0x38] sm:$0xff]   ;;  %v866_v15 = vld [vmem:[#allocation7 + $0x28] sm:$0xff]   ;;  %vm557_vm1 = vcmp.lt.s32.totalorder %v556_v35, 32  ;;  %p958_p11 = scmp.ne.s32.totalorder %s1283_s23, %s957_s11  ;;  %s1036_s28 = smov [#allocation8]  }
  0x6e   : > { %v324_v14 = vld [vmem:[%s1252_s29] sm:$0xff]  ;;  %s961_s14 = sshll.u32 %s1036_s28, 4  ;;  %s962_s14 = int_to_ptr.vmem [resolvable:$false] %s961_s14 }
  0x6f   : > { %v325_v16 = vpack.c.bf16 %v324_v14, %v324_v14  ;;  %v867_v17 = vld [vmem:[#allocation7 + $0x30] sm:$0xff]   ;;  %v868_v18 = vld [vmem:[#allocation7 + $0x38] sm:$0xff]   ;;  %p959_p1 = pnand %p958_p11, %p1346_p0  ;;  %s963_s22 = scalar_lea.vmem %s962_s14, 256 }
  0x70   : > { %745 = vmatpush3.bf16.msra.mxu0 %v854_v2  ;;  %765 = vmatpush3.bf16.msra.mxu1 %v862_v6  ;;  %v700_v19 = vld [vmem:[%s1327_s2] ss:$0 sm:$0xff]  ;;  %p964_p7 = scmp.lt.s32.totalorder %s1283_s23, %s962_s14  ;;  %p965_p9 = scmp.lt.s32.totalorder %s963_s22, %s957_s11 }
  0x71   : > { %746 = vmatprep.subr.bf16.mxu0 %v1034_v0  ;;  %766 = vmatprep.subr.bf16.mxu1 %v1034_v0  ;;  %v709_v27 = vld [vmem:[%s1329_s4] ss:$0 sm:$0xff]  ;;  %p960_p3 = pneg %p959_p1 }
  0x72   : > { %v718_v45 = vld [vmem:[%s1330_s5] ss:$0 sm:$0xff]  ;;  %p966_p12 = por %p965_p9, %p964_p7 }
  0x73   : > { %v719_v47 = vld [vmem:[%s1331_s6] ss:$0 sm:$0xff] }
  0x74   : > { %747 = vmatpush3.bf16.msra.mxu0 %v855_v3  ;;  %767 = vmatpush3.bf16.msra.mxu1 %v863_v8  ;;  %p967_p2 = pnand %p966_p12, %p960_p3 }
  0x75   : > { %748 = vmatprep.subr.bf16.mxu0 %v1034_v0  ;;  %768 = vmatprep.subr.bf16.mxu1 %v1034_v0 }
  0x78   : > { %749 = vmatpush3.bf16.msra.mxu0 %v856_v5  ;;  %769 = vmatpush3.bf16.msra.mxu1 %v864_v10 }
  0x79   : > { %750 = vmatprep.subr.bf16.mxu0 %v1034_v0  ;;  %770 = vmatprep.subr.bf16.mxu1 %v1034_v0 }
  0x7c   : > { %751 = vmatpush3.bf16.msra.mxu0 %v857_v7  ;;  %771 = vmatpush3.bf16.msra.mxu1 %v865_v12 }
  0x7d   : > { %752 = vmatprep.subr.bf16.mxu0 %v1034_v0  ;;  %772 = vmatprep.subr.bf16.mxu1 %v1034_v0 }
  0x80   : > { %753 = vmatpush3.bf16.msra.mxu0 %v858_v9  ;;  %773 = vmatpush3.bf16.msra.mxu1 %v866_v15 }
  0x81   : > { %754 = vmatprep.subr.bf16.mxu0 %v1034_v0  ;;  %774 = vmatprep.subr.bf16.mxu1 %v1034_v0 }
  0x84   : > { %755 = vmatpush3.bf16.msra.mxu0 %v859_v11  ;;  %775 = vmatpush3.bf16.msra.mxu1 %v867_v17 }
  0x85   : > { %756 = vmatprep.subr.bf16.mxu0 %v1034_v0  ;;  %776 = vmatprep.subr.bf16.mxu1 %v1034_v0 }
  0x88   : > { %757 = vmatpush3.bf16.msra.mxu0 %v860_v13  ;;  %777 = vmatpush3.bf16.msra.mxu1 %v868_v18 }
  0x8b   : > { %759 = vmatmul.mubr.bf16.vlgmr.msra.gmra.mrb[0].mxu0 %v325_v16 }
 0x15e   : > { %v431_v20 = vpop.f32.mrb[0].mxu0 }
 0x15f   : > { %v432_v21 = vadd.f32 %v700_v19, %v431_v20  ;;  %v760_v22 = vpop.f32.mrb[1].mxu0 }
 0x160   : > { %v434_v23 = vpop.f32.mrb[2].mxu0 }
 0x161   : > { %v437_v24 = vmax.f32 %v432_v21, 0.0  ;;  %v761_v25 = vpop.f32.mrb[3].mxu0 }
 0x163   : > { %v438_v26 = vpack.c.bf16 %v437_v24, %v437_v24 }
 0x165   : > { %779 = vmatmul.mubr.bf16.vlgmr.msra.gmra.mrb[0].mxu1 %v438_v26 }
 0x238   : > { %v544_v28 = vpop.f32.mrb[0].mxu1 }
 0x239   : > { %v545_v29 = vadd.f32 %v709_v27, %v544_v28  ;;  %v780_v30 = vpop.f32.mrb[1].mxu1 }
 0x23a   : > { %v547_v31 = vpop.f32.mrb[2].mxu1 }
 0x23b   : > { %v781_v32 = vpop.f32.mrb[3].mxu1  ;;  %v550_v33 = vadd.f32 %v545_v29, %v324_v14 }
 0x23d   : > { %551 = vadd.xlane.f32.xlu0 %v550_v33 }
 0x2ca   : > { %v552_v36 = vpop.xlane.xlu0 %551 }
 0x2cb   : > { %v553_v37 = vmul.f32 0.03125, %v552_v36 }
 0x2cd   : > { %v554_v38 = vsub.f32 %v550_v33, %v553_v37 }
 0x2cf   : > { %v560_v39 = vsel %vm557_vm1, %v554_v38, 0.0 }
 0x2d0   : > { %v561_v40 = vmul.f32 %v560_v39, %v560_v39 }
 0x2d2   : > { %562 = vadd.xlane.f32.xlu0 %v561_v40 }
 0x35f   : > { %v563_v41 = vpop.xlane.xlu0 %562 }
 0x360   : > { %v564_v42 = vmul.f32 0.03125, %v563_v41 }
 0x362   : > { %v565_v43 = vadd.f32 1e-05, %v564_v42 }
 0x364   : > { %869 = vrsqrt.f32 %v565_v43 }
 0x36e   : > { %v870_v44 = vpop.eup %869 }
 0x36f   : > { %v567_v46 = vmul.f32 %v870_v44, %v560_v39 }
 0x371   : > { %v575_v48 = vmul.f32 %v718_v45, %v567_v46 }
 0x373   : > { %v583_v49 = vadd.f32 %v719_v47, %v575_v48 }
 0x375   : > { %584 = vst [vmem:[%s322_s19] sm:$0xff] %v583_v49 }
 0x376   : > { %970 = shalt.err (!%p967_p2)
}
 0x377   : > { %s971_s12 = scalar_lea.hbm %s1281_s9, 128  ;;  %s975_s21 = scalar_lea.hbm %s1332_s7, 256 }
 0x378   : > { %p972_p13 = scmp.ne.s32.totalorder %s1281_s9, %s971_s12  ;;  %p976_p4 = scmp.lt.u32.totalorder %s1281_s9, %s1332_s7 }
 0x379   : > { %p977_p5 = scmp.lt.u32.totalorder %s975_s21, %s971_s12  ;;  %p979_p11 = scmp.lt.u32.totalorder %s971_s12, %s1281_s9 }
 0x37a   : > { %p973_p6 = pnand %p972_p13, %p1346_p0 }
 0x37b   : > { %p978_p8 = por %p977_p5, %p976_p4 }
 0x37c   : > { %p974_p10 = pneg %p973_p6 }
 0x37d   : > { %p980_p1 = por %p979_p11, %p978_p8 }
 0x37f   : > { %p981_p3 = pnand %p980_p1, %p974_p10 }
 0x381   : > { %984 = shalt.err (!%p981_p3)
}
 0x382   : > { %792 = dma.vmem_to_hbm [thread:$0]  (%p1346_p0), %s1283_s23, 128, %s1281_s9, %s586_s20  }
 0x383 PF: > { %s611_s29 = sand.u32 1, %s1015_s24   ;;  %p1347_p7 = scmp.ne.s32.totalorder %s1337_s8, 0 }
 0x384   : > { %p1348_p9 = scmp.ge.s32.totalorder %s1027_s27, 2  ;;  %s612_s30 = scalar_lea.sflag [#allocation4], %s611_s29 }
 0x386   : > { %p806_p12 = pnand %p1348_p9, %p1347_p7 }
 0x388   : > { %1010 = dma.done.wait (!%p806_p12), %s612_s30, 128  }
 0x389   : > { %1012 = vsyncadd (!%p806_p12), %s612_s30, 4294967168  ;;  %p21_p2 = scmp.ge.s32.totalorder %s1187_s13, 4   ;;  %s1349_s24 = smov %s1019_s25 }
 0x38a   : > { %s1350_s25 = smov %s1023_s26  ;;  %s1351_s26 = smov %s1203_s17 }
 0x38b   : > { %s1352_s27 = smov %s1187_s13  ;;  %23 = sbr.rel (!%p21_p2) target bundleno = 6 (0x6), region = 101 }
 0x392   :  { %617 = vsyncpa [#allocation3], 1 }
 0x393   :  { %619 = vsyncpa [#allocation3 + $0x1], 1 }
 0x394   :  { %620 = vsyncpa [#allocation6], 1 }
 0x395   :  { %621 = vsyncpa [#allocation4], 1 }
 0x396   :  { %623 = vsyncpa [#allocation4 + $0x1], 1 }

// kernel: tpu_custom_call.1
= control target key start
LH: loop header
LB: loop body
LE: loop exit
PB: predicated region body
PF: predicated region fallthrough
CT: control target
= control target key end

     0   :  { %12 = vsyncpa [#allocation3], 0  ;;  %s1325_s0 = inlined_call_operand.hbm [shape: f32[16,128], index: 0, kind: input, shape index: {}]   ;;  %s1326_s1 = inlined_call_operand.hbm [shape: bf16[128,128], index: 1, kind: input, shape index: {}]   ;;  %s1327_s2 = inlined_call_operand.vmem [shape: f32[1,128], index: 2, kind: input, shape index: {}]   ;;  %s1328_s3 = inlined_call_operand.hbm [shape: bf16[128,128], index: 3, kind: input, shape index: {}]   ;;  %s1329_s4 = inlined_call_operand.vmem [shape: f32[1,128], index: 4, kind: input, shape index: {}]   ;;  %s1330_s5 = inlined_call_operand.vmem [shape: f32[1,128], index: 5, kind: input, shape index: {}]   ;;  %s1331_s6 = inlined_call_operand.vmem [shape: f32[1,128], index: 6, kind: input, shape index: {}]   ;;  %s1332_s7 = inlined_call_operand.hbm [shape: f32[16,128], index: 7, kind: output, shape index: {}]  }
   0x1   :  { %14 = vsyncpa [#allocation3 + $0x1], 0 }
   0x2   :  { %15 = vsyncpa [#allocation6], 0 }
   0x3   :  { %16 = vsyncpa [#allocation4], 0 }
   0x4   :  { %18 = vsyncpa [#allocation4 + $0x1], 0  ;;  %s1077_s24 = smov 0   ;;  %s1079_s25 = smov 0  }
   0x5   :  { %s1081_s26 = smov 0   ;;  %s1083_s27 = smov 0  }
   0x6 LB: > { %s1098_s28 = sadd.s32 4294967295, %s1027_s27   ;;  %s688_s29 = sadd.s32 4294967294, %s1027_s27   ;;  %s1027_s27 = sphi %s1083_s27, %s1352_s27   ;;  %s1023_s26 = sphi %s1081_s26, %s1351_s26   ;;  %s1019_s25 = sphi %s1079_s25, %s1350_s25   ;;  %s1015_s24 = sphi %s1077_s24, %s1349_s24  }
   0x7   : > { %p44_p0 = scmp.ne.s32.totalorder %s1019_s25, %s1015_s24  ;;  %p1333_p1 = scmp.eq.s32.totalorder %s1098_s28, 0 }
   0x8   : > { %p200_p3 = scmp.eq.s32.totalorder %s688_s29, 1  ;;  %p689_p5 = scmp.ge.s32.totalorder %s1027_s27, 1 }
   0x9   : > { %p1107_p4 = por %p1333_p1, %p44_p0  ;;  %p207_p7 = scmp.lt.s32.totalorder %s1027_s27, 3 }
   0xa   : > { %p1112_p6 = por %p200_p3, %p44_p0  ;;  %s1029_s10 = smov [#allocation5]  }
   0xb   : > { %s1336_s30 = scalar_select %p1107_p4, 1, 0 }
   0xc   : > { %s1337_s8 = scalar_select %p1112_p6, 1, 0 }
   0xd   : > { %p1117_p8 = pnand %p689_p5, %p207_p7  ;;  %s219_s11 = sshll.u32 %s1029_s10, 4  ;;  %s1121_s11 = int_to_ptr.vmem [resolvable:$true] %s219_s11 }
   0xe   : > { %s1030_s13 = smov [#allocation7]   ;;  %s871_s17 = scalar_lea.hbm %s1326_s1, 1024 }
   0xf   : > { %p794_p9 = pneg %p1117_p8  ;;  %s235_s14 = sshll.u32 %s1030_s13, 4  ;;  %s1132_s14 = int_to_ptr.vmem [resolvable:$true] %s235_s14 }
  0x10   : > { %p872_p12 = scmp.ne.s32.totalorder %s1326_s1, %s871_s17  ;;  %p878_p5 = scmp.lt.u32.totalorder %s871_s17, %s1326_s1 }
  0x11   : > { %p1128_p11 = pnand %p794_p9, %p1333_p1 }
  0x13   : > { %p873_p13 = pneg %p1128_p11 }
  0x15   : > { %p874_p0 = pnand %p873_p13, %p872_p12 }
  0x17   : > { %p875_p3 = pneg %p874_p0 }
  0x19   : > { %p880_p7 = pnand %p878_p5, %p875_p3 }
  0x1b   : > { %883 = shalt.err (!%p880_p7)
}
  0x1c   : > { %s884_s22 = scalar_lea.vmem %s1121_s11, 1024  ;;  %p892_p2 = scmp.lt.s32.totalorder %s1121_s11, %s1121_s11 }
  0x1d   : > { %p885_p9 = scmp.ne.s32.totalorder %s1121_s11, %s884_s22  ;;  %p893_p12 = scmp.lt.s32.totalorder %s884_s22, %s884_s22 }
  0x1f   : > { %p887_p10 = pnand %p885_p9, %p873_p13  ;;  %p894_p0 = por %p893_p12, %p892_p2 }
  0x21   : > { %p888_p1 = pneg %p887_p10 }
  0x23   : > { %p895_p6 = pnand %p894_p0, %p888_p1 }
  0x25   : > { %898 = shalt.err (!%p895_p6)
}
  0x26   : > { %s1031_s23 = smov 64   ;;  %s1032_s29 = smov 4  }
  0x27   : > { %797 = dma.hbm_to_vmem [thread:$0]  (!%p1128_p11), %s1326_s1, 1024, %s1121_s11, [#allocation6], %s1031_s23, %s1031_s23, %s1032_s29  }
  0x28   : > { %s899_s17 = scalar_lea.hbm %s1328_s3, 1024 }
  0x29   : > { %p900_p2 = scmp.ne.s32.totalorder %s1328_s3, %s899_s17  ;;  %p906_p10 = scmp.lt.u32.totalorder %s899_s17, %s1328_s3 }
  0x2b   : > { %p902_p1 = pnand %p900_p2, %p873_p13 }
  0x2d   : > { %p903_p6 = pneg %p902_p1 }
  0x2f   : > { %p908_p3 = pnand %p906_p10, %p903_p6 }
  0x31   : > { %911 = shalt.err (!%p908_p3)
}
  0x32   : > { %s912_s11 = scalar_lea.vmem %s1132_s14, 1024  ;;  %p920_p12 = scmp.lt.s32.totalorder %s1132_s14, %s1132_s14 }
  0x33   : > { %p913_p5 = scmp.ne.s32.totalorder %s1132_s14, %s912_s11  ;;  %p921_p0 = scmp.lt.s32.totalorder %s912_s11, %s912_s11 }
  0x35   : > { %p915_p7 = pnand %p913_p5, %p873_p13  ;;  %p922_p2 = por %p921_p0, %p920_p12 }
  0x37   : > { %p916_p9 = pneg %p915_p7 }
  0x39   : > { %p923_p1 = pnand %p922_p2, %p916_p9 }
  0x3b   : > { %926 = shalt.err (!%p923_p1)
}
  0x3c   : > { %800 = dma.hbm_to_vmem [thread:$0]  (!%p1128_p11), %s1328_s3, 1024, %s1132_s14, [#allocation6], %s1031_s23, %s1031_s23, %s1032_s29  }
  0x3d   : > { %s1187_s13 = sadd.s32 1, %s1027_s27   ;;  %s31_s12 = sadd.s32 1, %s1023_s26 }
  0x3e   : > { %s28_s15 = ssub.s32 %s1027_s27, %s1187_s13  ;;  %p38_p13 = scmp.ne.s32.totalorder %s1023_s26, %s1019_s25 }
  0x3f   : > { %p29_p6 = scmp.eq.s32.totalorder %s28_s15, 0  ;;  %p39_p10 = scmp.eq.s32.totalorder %s1027_s27, 0 }
  0x40   : > { %p1340_p3 = scmp.eq.s32.totalorder %s1098_s28, 1  ;;  %p811_p7 = scmp.lt.s32.totalorder %s1027_s27, 2 }
  0x41   : > { %s1203_s17 = scalar_select %p29_p6, %s1023_s26, %s31_s12  }
  0x42   : > { %p1197_p5 = por %p1340_p3, %p38_p13  ;;  %p40_p9 = por %p39_p10, %p38_p13 }
  0x43   : > { %s258_s18 = sand.u32 1, %s1023_s26   ;;  %s694_s14 = sshll.u32 %s1027_s27, 7 }
  0x44   : > { %s1341_s16 = scalar_select %p1197_p5, 1, 0 }
  0x45   : > { %s693_s19 = sshll.u32 %s258_s18, 3  ;;  %s1210_s20 = scalar_lea.hbm %s1325_s0, %s694_s14 }
  0x46   : > { %s262_s21 = scalar_lea.vmem [#allocation2], %s693_s19  ;;  %p1214_p11 = pnand %p811_p7, %p40_p9 }
  0x47   : > { %s269_s11 = sshll.u32 %s262_s21, 4  ;;  %s259_s10 = scalar_lea.sflag [#allocation3], %s258_s18  ;;  %s1212_s11 = int_to_ptr.vmem [resolvable:$true] %s269_s11 }
  0x48   : > { %s927_s12 = scalar_lea.hbm %s1210_s20, 128  ;;  %p929_p0 = pneg %p1214_p11 }
  0x49   : > { %p928_p12 = scmp.ne.s32.totalorder %s1210_s20, %s927_s12  ;;  %s932_s14 = scalar_lea.hbm %s1325_s0, 256 }
  0x4a   : > { %p933_p13 = scmp.lt.u32.totalorder %s1210_s20, %s1325_s0  ;;  %p934_p6 = scmp.lt.u32.totalorder %s932_s14, %s927_s12 }
  0x4b   : > { %p930_p2 = pnand %p929_p0, %p928_p12  ;;  %p936_p3 = scmp.lt.u32.totalorder %s927_s12, %s1210_s20 }
  0x4c   : > { %p935_p10 = por %p934_p6, %p933_p13 }
  0x4d   : > { %p931_p1 = pneg %p930_p2 }
  0x4e   : > { %p937_p7 = por %p936_p3, %p935_p10 }
  0x50   : > { %p938_p9 = pnand %p937_p7, %p931_p1 }
  0x52   : > { %941 = shalt.err (!%p938_p9)
}
  0x53   : > { %s942_s18 = scalar_lea.vmem %s1212_s11, 128  ;;  %s1033_s21 = smov [#allocation2]  }
  0x54   : > { %p943_p12 = scmp.ne.s32.totalorder %s1212_s11, %s942_s18  ;;  %s947_s15 = sshll.u32 %s1033_s21, 4  ;;  %s948_s15 = int_to_ptr.vmem [resolvable:$false] %s947_s15 }
  0x55   : > { %s949_s19 = scalar_lea.vmem %s948_s15, 256  ;;  %p950_p4 = scmp.lt.s32.totalorder %s1212_s11, %s948_s15 }
  0x56   : > { %p945_p2 = pnand %p943_p12, %p929_p0  ;;  %p951_p13 = scmp.lt.s32.totalorder %s949_s19, %s942_s18 }
  0x58   : > { %p946_p5 = pneg %p945_p2  ;;  %p952_p6 = por %p951_p13, %p950_p4 }
  0x5a   : > { %p953_p10 = pnand %p952_p6, %p946_p5 }
  0x5c   : > { %956 = shalt.err (!%p953_p10)
}
  0x5d   : > { %804 = dma.hbm_to_vmem [thread:$0]  (!%p1214_p11), %s1210_s20, 128, %s1212_s11, %s259_s10  }
  0x5e   : > { %278 = sbr.rel (%p1117_p8) target bundleno = 899 (0x383), region = 48  ;;  %s1246_s12 = sand.u32 (!%p1117_p8), 1, %s1019_s25  }
  0x5f   : > { %s696_s14 = sshll.u32 (!%p1117_p8), %s1246_s12, 3  ;;  %s281_s23 = scalar_lea.sflag (!%p1117_p8), [#allocation3], %s1246_s12 }
  0x60   : > { %s1252_s29 = scalar_lea.vmem (!%p1117_p8), [#allocation2], %s696_s14  ;;  %p1343_p4 = scmp.ne.s32.totalorder (!%p1117_p8), %s1336_s30, 0 }
  0x65   : > { %1002 = dma.done.wait (%p1343_p4), %s281_s23, 128  }
  0x66   : > { %1004 = vsyncadd (%p1343_p4), %s281_s23, 4294967168  ;;  %p1344_p5 = scmp.eq.s32.totalorder %s1098_s28, 0 }
  0x68   : > { %1006 = dma.done.wait (%p1344_p5), [#allocation6], 2048   ;;  %p1345_p8 = pmov %p1344_p5 }
  0x69   : > { %v1034_v0 = vmov 0.0   ;;  %vm1035_vm0 = vmmov 0   ;;  %v853_v1 = vld [vmem:[#allocation5] sm:$0xff]   ;;  %v854_v2 = vld [vmem:[#allocation5 + $0x8] sm:$0xff]   ;;  %v855_v3 = vld [vmem:[#allocation5 + $0x10] sm:$0xff]   ;;  %v555_v34 = vlaneseq  ;;  %s721_s15 = sshll.u32 %s1098_s28, 7 }
  0x6a   : > { %1008 = vsyncadd (%p1345_p8), [#allocation6], 4294965248  ;;  %742 = vmatprep.subr.bf16.mxu0 %v1034_v0  ;;  %758 = vmatprep.mubr.msk.bf16.mxu0 %vm1035_vm0, %v1034_v0  ;;  %v861_v4 = vld [vmem:[#allocation7] sm:$0xff]   ;;  %v856_v5 = vld [vmem:[#allocation5 + $0x18] sm:$0xff]   ;;  %s322_s19 = scalar_lea.vmem [#allocation8], %s696_s14  ;;  %s1281_s9 = scalar_lea.hbm %s1332_s7, %s721_s15 }
  0x6b   : > { %762 = vmatprep.subr.bf16.mxu1 %v1034_v0  ;;  %778 = vmatprep.mubr.msk.bf16.mxu1 %vm1035_vm0, %v1034_v0  ;;  %v862_v6 = vld [vmem:[#allocation7 + $0x8] sm:$0xff]   ;;  %v857_v7 = vld [vmem:[#allocation5 + $0x20] sm:$0xff]   ;;  %v863_v8 = vld [vmem:[#allocation7 + $0x10] sm:$0xff]   ;;  %v556_v35 = vand.u32 127, %v555_v34  ;;  %s599_s23 = sshll.u32 %s322_s19, 4  ;;  %s586_s20 = scalar_lea.sflag [#allocation4], %s1246_s12  ;;  %s1283_s23 = int_to_ptr.vmem [resolvable:$true] %s599_s23 }
  0x6c   : > { %743 = vmatpush3.bf16.msra.mxu0 %v853_v1  ;;  %763 = vmatpush3.bf16.msra.mxu1 %v861_v4  ;;  %v858_v9 = vld [vmem:[#allocation5 + $0x28] sm:$0xff]   ;;  %v864_v10 = vld [vmem:[#allocation7 + $0x18] sm:$0xff]   ;;  %v859_v11 = vld [vmem:[#allocation5 + $0x30] sm:$0xff]   ;;  %s957_s11 = scalar_lea.vmem %s1283_s23, 128  ;;  %p1346_p0 = scmp.ne.s32.totalorder %s1341_s16, 0 }
  0x6d   : > { %744 = vmatprep.subr.bf16.mxu0 %v1034_v0  ;;  %764 = vmatprep.subr.bf16.mxu1 %v1034_v0  ;;  %v865_v12 = vld [vmem:[#allocation7 + $0x20] sm:$0xff]   ;;  %v860_v13 = vld [vmem:[#allocation5 + $0x38] sm:$0xff]   ;;  %v866_v15 = vld [vmem:[#allocation7 + $0x28] sm:$0xff]   ;;  %vm557_vm1 = vcmp.lt.s32.totalorder %v556_v35, 32  ;;  %p958_p11 = scmp.ne.s32.totalorder %s1283_s23, %s957_s11  ;;  %s1036_s28 = smov [#allocation8]  }
  0x6e   : > { %v324_v14 = vld [vmem:[%s1252_s29] sm:$0xff]  ;;  %s961_s14 = sshll.u32 %s1036_s28, 4  ;;  %s962_s14 = int_to_ptr.vmem [resolvable:$false] %s961_s14 }
  0x6f   : > { %v325_v16 = vpack.c.bf16 %v324_v14, %v324_v14  ;;  %v867_v17 = vld [vmem:[#allocation7 + $0x30] sm:$0xff]   ;;  %v868_v18 = vld [vmem:[#allocation7 + $0x38] sm:$0xff]   ;;  %p959_p1 = pnand %p958_p11, %p1346_p0  ;;  %s963_s22 = scalar_lea.vmem %s962_s14, 256 }
  0x70   : > { %745 = vmatpush3.bf16.msra.mxu0 %v854_v2  ;;  %765 = vmatpush3.bf16.msra.mxu1 %v862_v6  ;;  %v700_v19 = vld [vmem:[%s1327_s2] ss:$0 sm:$0xff]  ;;  %p964_p7 = scmp.lt.s32.totalorder %s1283_s23, %s962_s14  ;;  %p965_p9 = scmp.lt.s32.totalorder %s963_s22, %s957_s11 }
  0x71   : > { %746 = vmatprep.subr.bf16.mxu0 %v1034_v0  ;;  %766 = vmatprep.subr.bf16.mxu1 %v1034_v0  ;;  %v709_v27 = vld [vmem:[%s1329_s4] ss:$0 sm:$0xff]  ;;  %p960_p3 = pneg %p959_p1 }
  0x72   : > { %v718_v45 = vld [vmem:[%s1330_s5] ss:$0 sm:$0xff]  ;;  %p966_p12 = por %p965_p9, %p964_p7 }
  0x73   : > { %v719_v47 = vld [vmem:[%s1331_s6] ss:$0 sm:$0xff] }
  0x74   : > { %747 = vmatpush3.bf16.msra.mxu0 %v855_v3  ;;  %767 = vmatpush3.bf16.msra.mxu1 %v863_v8  ;;  %p967_p2 = pnand %p966_p12, %p960_p3 }
  0x75   : > { %748 = vmatprep.subr.bf16.mxu0 %v1034_v0  ;;  %768 = vmatprep.subr.bf16.mxu1 %v1034_v0 }
  0x78   : > { %749 = vmatpush3.bf16.msra.mxu0 %v856_v5  ;;  %769 = vmatpush3.bf16.msra.mxu1 %v864_v10 }
  0x79   : > { %750 = vmatprep.subr.bf16.mxu0 %v1034_v0  ;;  %770 = vmatprep.subr.bf16.mxu1 %v1034_v0 }
  0x7c   : > { %751 = vmatpush3.bf16.msra.mxu0 %v857_v7  ;;  %771 = vmatpush3.bf16.msra.mxu1 %v865_v12 }
  0x7d   : > { %752 = vmatprep.subr.bf16.mxu0 %v1034_v0  ;;  %772 = vmatprep.subr.bf16.mxu1 %v1034_v0 }
  0x80   : > { %753 = vmatpush3.bf16.msra.mxu0 %v858_v9  ;;  %773 = vmatpush3.bf16.msra.mxu1 %v866_v15 }
  0x81   : > { %754 = vmatprep.subr.bf16.mxu0 %v1034_v0  ;;  %774 = vmatprep.subr.bf16.mxu1 %v1034_v0 }
  0x84   : > { %755 = vmatpush3.bf16.msra.mxu0 %v859_v11  ;;  %775 = vmatpush3.bf16.msra.mxu1 %v867_v17 }
  0x85   : > { %756 = vmatprep.subr.bf16.mxu0 %v1034_v0  ;;  %776 = vmatprep.subr.bf16.mxu1 %v1034_v0 }
  0x88   : > { %757 = vmatpush3.bf16.msra.mxu0 %v860_v13  ;;  %777 = vmatpush3.bf16.msra.mxu1 %v868_v18 }
  0x8b   : > { %759 = vmatmul.mubr.bf16.vlgmr.msra.gmra.mrb[0].mxu0 %v325_v16 }
 0x15e   : > { %v431_v20 = vpop.f32.mrb[0].mxu0 }
 0x15f   : > { %v432_v21 = vadd.f32 %v700_v19, %v431_v20  ;;  %v760_v22 = vpop.f32.mrb[1].mxu0 }
 0x160   : > { %v434_v23 = vpop.f32.mrb[2].mxu0 }
 0x161   : > { %v437_v24 = vmax.f32 %v432_v21, 0.0  ;;  %v761_v25 = vpop.f32.mrb[3].mxu0 }
 0x163   : > { %v438_v26 = vpack.c.bf16 %v437_v24, %v437_v24 }
 0x165   : > { %779 = vmatmul.mubr.bf16.vlgmr.msra.gmra.mrb[0].mxu1 %v438_v26 }
 0x238   : > { %v544_v28 = vpop.f32.mrb[0].mxu1 }
 0x239   : > { %v545_v29 = vadd.f32 %v709_v27, %v544_v28  ;;  %v780_v30 = vpop.f32.mrb[1].mxu1 }
 0x23a   : > { %v547_v31 = vpop.f32.mrb[2].mxu1 }
 0x23b   : > { %v781_v32 = vpop.f32.mrb[3].mxu1  ;;  %v550_v33 = vadd.f32 %v545_v29, %v324_v14 }
 0x23d   : > { %551 = vadd.xlane.f32.xlu0 %v550_v33 }
 0x2ca   : > { %v552_v36 = vpop.xlane.xlu0 %551 }
 0x2cb   : > { %v553_v37 = vmul.f32 0.03125, %v552_v36 }
 0x2cd   : > { %v554_v38 = vsub.f32 %v550_v33, %v553_v37 }
 0x2cf   : > { %v560_v39 = vsel %vm557_vm1, %v554_v38, 0.0 }
 0x2d0   : > { %v561_v40 = vmul.f32 %v560_v39, %v560_v39 }
 0x2d2   : > { %562 = vadd.xlane.f32.xlu0 %v561_v40 }
 0x35f   : > { %v563_v41 = vpop.xlane.xlu0 %562 }
 0x360   : > { %v564_v42 = vmul.f32 0.03125, %v563_v41 }
 0x362   : > { %v565_v43 = vadd.f32 1e-05, %v564_v42 }
 0x364   : > { %869 = vrsqrt.f32 %v565_v43 }
 0x36e   : > { %v870_v44 = vpop.eup %869 }
 0x36f   : > { %v567_v46 = vmul.f32 %v870_v44, %v560_v39 }
 0x371   : > { %v575_v48 = vmul.f32 %v718_v45, %v567_v46 }
 0x373   : > { %v583_v49 = vadd.f32 %v719_v47, %v575_v48 }
 0x375   : > { %584 = vst [vmem:[%s322_s19] sm:$0xff] %v583_v49 }
 0x376   : > { %970 = shalt.err (!%p967_p2)
}
 0x377   : > { %s971_s12 = scalar_lea.hbm %s1281_s9, 128  ;;  %s975_s21 = scalar_lea.hbm %s1332_s7, 256 }
 0x378   : > { %p972_p13 = scmp.ne.s32.totalorder %s1281_s9, %s971_s12  ;;  %p976_p4 = scmp.lt.u32.totalorder %s1281_s9, %s1332_s7 }
 0x379   : > { %p977_p5 = scmp.lt.u32.totalorder %s975_s21, %s971_s12  ;;  %p979_p11 = scmp.lt.u32.totalorder %s971_s12, %s1281_s9 }
 0x37a   : > { %p973_p6 = pnand %p972_p13, %p1346_p0 }
 0x37b   : > { %p978_p8 = por %p977_p5, %p976_p4 }
 0x37c   : > { %p974_p10 = pneg %p973_p6 }
 0x37d   : > { %p980_p1 = por %p979_p11, %p978_p8 }
 0x37f   : > { %p981_p3 = pnand %p980_p1, %p974_p10 }
 0x381   : > { %984 = shalt.err (!%p981_p3)
}
 0x382   : > { %792 = dma.vmem_to_hbm [thread:$0]  (%p1346_p0), %s1283_s23, 128, %s1281_s9, %s586_s20  }
 0x383 PF: > { %s611_s29 = sand.u32 1, %s1015_s24   ;;  %p1347_p7 = scmp.ne.s32.totalorder %s1337_s8, 0 }
 0x384   : > { %p1348_p9 = scmp.ge.s32.totalorder %s1027_s27, 2  ;;  %s612_s30 = scalar_lea.sflag [#allocation4], %s611_s29 }
 0x386   : > { %p806_p12 = pnand %p1348_p9, %p1347_p7 }
 0x388   : > { %1010 = dma.done.wait (!%p806_p12), %s612_s30, 128  }
 0x389   : > { %1012 = vsyncadd (!%p806_p12), %s612_s30, 4294967168  ;;  %p21_p2 = scmp.ge.s32.totalorder %s1187_s13, 4   ;;  %s1349_s24 = smov %s1019_s25 }
 0x38a   : > { %s1350_s25 = smov %s1023_s26  ;;  %s1351_s26 = smov %s1203_s17 }
 0x38b   : > { %s1352_s27 = smov %s1187_s13  ;;  %23 = sbr.rel (!%p21_p2) target bundleno = 6 (0x6), region = 101 }
 0x392   :  { %617 = vsyncpa [#allocation3], 1 }
 0x393   :  { %619 = vsyncpa [#allocation3 + $0x1], 1 }
 0x394   :  { %620 = vsyncpa [#allocation6], 1 }
 0x395   :  { %621 = vsyncpa [#allocation4], 1 }
 0x396   :  { %623 = vsyncpa [#allocation4 + $0x1], 1 }

</bundles_post_ra>
